<compile_context>
chip_gen: v6e
topology: v6e:2x2x1
jax: 0.10.0
libtpu: 0.0.40
codegen_flags: <defaults>
</compile_context>

<pallas_src>
import jax
import jax.numpy as jnp
from jax import lax
from jax.experimental import pallas as pl
from jax.experimental.pallas import tpu as pltpu


def conv1_gelu_kernel(w_ref, b_ref, p_ref, o_ref):
    # w_ref: (Cout, K)   conv1 weights, K ordered (cin, kh, kw)
    # b_ref: (Cout, 1)   conv1 bias
    # p_ref: (K, HW)     im2col patches for one batch element
    # o_ref: (Cout, HW)  fused conv + tanh-GELU output for one batch element
    v1 = jnp.dot(w_ref[...], p_ref[...], preferred_element_type=jnp.float32)
    v1 = v1 + b_ref[...]                       # bias, broadcast along lanes
    # tanh-GELU, same math as v2..v10 in the PyTorch graph (constants folded)
    c0 = 0.7978845608028654
    c1 = 0.044715 * c0
    inner = v1 * (c0 + c1 * (v1 * v1))         # == v7
    o_ref[...] = (0.5 * v1 * (1.0 + jnp.tanh(inner))).astype(o_ref.dtype)


@jax.jit
def model_forward(x_nchw, w_conv1, b_conv1):
    """x_nchw: (N, 10, H, W) float32. Returns (N, 16, Ho, Wo) float32."""
    N, Cin, H, W = x_nchw.shape
    Cout, _, KH, KW = w_conv1.shape
    stride, pad = 3, 1
    assert stride == KH == KW, "non-overlapping im2col trick needs stride == kernel"
    Ho = (H + 2 * pad - KH) // stride + 1
    Wo = (W + 2 * pad - KW) // stride + 1
    K = Cin * KH * KW            # contraction, ordered (cin, kh, kw)
    HW = Ho * Wo                 # per-batch output pixels (lane dim)

    # conv padding + crop to exactly (KH*Ho, KW*Wo) in ONE pad op
    # (negative high padding crops; windows tile this region exactly).
    x_crop = lax.pad(
        x_nchw.astype(jnp.float32), jnp.float32(0.0),
        ((0, 0, 0), (0, 0, 0),
         (pad, KH * Ho - pad - H, 0),
         (pad, KW * Wo - pad - W, 0)))
    # (N, Cin, KH*Ho, KW*Wo) -> (N, Cin, Ho, KH, Wo, KW): free reshape
    x_r = x_crop.reshape(N, Cin, Ho, KH, Wo, KW)
    # -> (N, Cin, KH, KW, Ho, Wo): the only real data-movement HLO (~|x| bytes)
    patches = jnp.transpose(x_r, (0, 1, 3, 5, 2, 4)).reshape(N, K, HW)

    # (Cout, Cin, KH, KW) flattens to (cin, kh, kw) order: no transpose needed.
    w2d = w_conv1.reshape(Cout, K).astype(jnp.float32)
    b2d = b_conv1.reshape(Cout, 1).astype(jnp.float32)

    cost = pl.CostEstimate(
        flops=2 * N * Cout * K * HW + 8 * N * Cout * HW,
        transcendentals=N * Cout * HW,
        bytes_accessed=4 * (N * K * HW + Cout * K + Cout + N * Cout * HW))

    out = pl.pallas_call(
        conv1_gelu_kernel,
        out_shape=jax.ShapeDtypeStruct((N, Cout, HW), jnp.float32),
        grid=(N,),
        in_specs=[
            pl.BlockSpec((Cout, K), lambda n: (0, 0)),      # weights, resident
            pl.BlockSpec((Cout, 1), lambda n: (0, 0)),      # bias, resident
            pl.BlockSpec((None, K, HW), lambda n: (n, 0, 0)),
        ],
        out_specs=pl.BlockSpec((None, Cout, HW), lambda n: (n, 0, 0)),
        compiler_params=pltpu.CompilerParams(dimension_semantics=("parallel",)),
        cost_estimate=cost,
    )(w2d, b2d, patches)

    # (N, Cout, HW) -> NCHW is a free reshape (no transpose, no slice).
    return out.reshape(N, Cout, Ho, Wo)


def _reference(x_nchw, w_conv1, b_conv1):
    """Pure-JAX reference: conv1 (stride 3, pad 1) + tanh-GELU, original op order."""
    v1 = lax.conv_general_dilated(
        x_nchw, w_conv1, window_strides=(3, 3), padding=((1, 1), (1, 1)),
        dimension_numbers=("NCHW", "OIHW", "NCHW"))
    v1 = v1 + b_conv1.reshape(1, -1, 1, 1)
    v2 = v1 * 0.5
    v6 = v1 + (v1 * v1 * v1) * 0.044715
    v9 = jnp.tanh(v6 * 0.7978845608028654) + 1.0
    return v2 * v9


if __name__ == "__main__":
    key = jax.random.PRNGKey(0)
    k_x, k_w, k_b = jax.random.split(key, 3)

    # Small shapes consistent with the module: N=2, Cin=10, spatial 30x33.
    N, Cin, H, W = 2, 10, 30, 33
    Cout, KH, KW = 16, 3, 3

    x = jax.random.normal(k_x, (N, Cin, H, W), dtype=jnp.float32)
    fan_in = Cin * KH * KW
    bound = 1.0 / jnp.sqrt(fan_in)
    w_conv1 = jax.random.uniform(k_w, (Cout, Cin, KH, KW), jnp.float32,
                                 minval=-bound, maxval=bound)
    b_conv1 = jax.random.uniform(k_b, (Cout,), jnp.float32,
                                 minval=-bound, maxval=bound)

    out = jax.block_until_ready(model_forward(x, w_conv1, b_conv1))
    ref = jax.block_until_ready(_reference(x, w_conv1, b_conv1))

    assert out.shape == ref.shape, (out.shape, ref.shape)
    assert jnp.allclose(out, ref, atol=1e-4, rtol=1e-4), float(
        jnp.max(jnp.abs(out - ref)))

    print("KERNEL_OK")
</pallas_src>

<mosaic_0001>
module attributes {stable_mosaic.version = 11 : i64} {
  func.func @conv1_gelu_kernel(%arg0: i32, %arg1: memref<16x90xf32, #tpu.memory_space<vmem>>, %arg2: memref<16x1xf32, #tpu.memory_space<vmem>>, %arg3: memref<1x90x110xf32, #tpu.memory_space<vmem>>, %arg4: memref<1x16x110xf32, #tpu.memory_space<vmem>>) attributes {dimension_semantics = [#tpu.dimension_semantics<parallel>], iteration_bounds = array<i64: 2>, scalar_prefetch = 0 : i64, scratch_operands = 0 : i64, tpu.core_type = #tpu.core_type<tc>, window_params = [{pipeline_mode = #tpu.pipeline_mode<synchronous>, transform_indices = @transform_0, window_bounds = array<i64: 16, 90>}, {pipeline_mode = #tpu.pipeline_mode<synchronous>, transform_indices = @transform_1, window_bounds = array<i64: 16, 1>}, {transform_indices = @transform_2, window_bounds = array<i64: 1, 90, 110>}, {transform_indices = @transform_3, window_bounds = array<i64: 1, 16, 110>}]} {
    %c0 = arith.constant 0 : index
    %c0_0 = arith.constant 0 : index
    %0 = vector.load %arg1[%c0, %c0_0] : memref<16x90xf32, #tpu.memory_space<vmem>>, vector<16x90xf32>
    %c0_1 = arith.constant 0 : index
    %c0_2 = arith.constant 0 : index
    %c0_3 = arith.constant 0 : index
    %1 = vector.load %arg3[%c0_1, %c0_2, %c0_3] : memref<1x90x110xf32, #tpu.memory_space<vmem>>, vector<1x90x110xf32>
    %2 = vector.shape_cast %1 : vector<1x90x110xf32> to vector<90x110xf32>
    %cst = arith.constant dense<0.000000e+00> : vector<16x110xf32>
    %3 = tpu.matmul %0, %2, %cst {dimension_numbers = #tpu.dot_dimension_numbers<[1], [0], [0], [1], [0, 0, 1, 1], [], []>} : vector<16x90xf32>, vector<90x110xf32>, vector<16x110xf32> -> vector<16x110xf32>
    %c0_4 = arith.constant 0 : index
    %c0_5 = arith.constant 0 : index
    %4 = vector.load %arg2[%c0_4, %c0_5] : memref<16x1xf32, #tpu.memory_space<vmem>>, vector<16x1xf32>
    %5 = vector.broadcast %4 : vector<16x1xf32> to vector<16x110xf32>
    %6 = arith.addf %3, %5 : vector<16x110xf32>
    %7 = arith.mulf %6, %6 : vector<16x110xf32>
    %cst_6 = arith.constant 0.0356774069 : f32
    %8 = vector.broadcast %cst_6 : f32 to vector<16x110xf32>
    %9 = arith.mulf %8, %7 : vector<16x110xf32>
    %cst_7 = arith.constant 0.797884583 : f32
    %10 = vector.broadcast %cst_7 : f32 to vector<16x110xf32>
    %11 = arith.addf %10, %9 : vector<16x110xf32>
    %12 = arith.mulf %6, %11 : vector<16x110xf32>
    %cst_8 = arith.constant 5.000000e-01 : f32
    %13 = vector.broadcast %cst_8 : f32 to vector<16x110xf32>
    %14 = arith.mulf %13, %6 : vector<16x110xf32>
    %15 = math.tanh %12 : vector<16x110xf32>
    %cst_9 = arith.constant 1.000000e+00 : f32
    %16 = vector.broadcast %cst_9 : f32 to vector<16x110xf32>
    %17 = arith.addf %16, %15 : vector<16x110xf32>
    %18 = arith.mulf %14, %17 : vector<16x110xf32>
    %c0_10 = arith.constant 0 : index
    %c0_11 = arith.constant 0 : index
    %c0_12 = arith.constant 0 : index
    %19 = vector.load %arg4[%c0_10, %c0_11, %c0_12] : memref<1x16x110xf32, #tpu.memory_space<vmem>>, vector<1x16x110xf32>
    %20 = vector.shape_cast %19 : vector<1x16x110xf32> to vector<16x110xf32>
    %21 = vector.shape_cast %18 : vector<16x110xf32> to vector<1x16x110xf32>
    tpu.vector_store %arg4[%c0_10, %c0_11, %c0_12], %21 {strides = array<i32>} : memref<1x16x110xf32, #tpu.memory_space<vmem>>, vector<1x16x110xf32>,
    return
  }
  func.func @transform_0(%arg0: i32) -> (i32, i32) {
    %c0_i32 = arith.constant 0 : i32
    %c0_i32_0 = arith.constant 0 : i32
    %c0_i32_1 = arith.constant 0 : i32
    return %c0_i32, %c0_i32_0 : i32, i32
  }
  func.func @transform_1(%arg0: i32) -> (i32, i32) {
    %c0_i32 = arith.constant 0 : i32
    %c0_i32_0 = arith.constant 0 : i32
    %c0_i32_1 = arith.constant 0 : i32
    return %c0_i32, %c0_i32_0 : i32, i32
  }
  func.func @transform_2(%arg0: i32) -> (i32, i32, i32) {
    %c0_i32 = arith.constant 0 : i32
    %c0_i32_0 = arith.constant 0 : i32
    %c0_i32_1 = arith.constant 0 : i32
    return %arg0, %c0_i32, %c0_i32_0 : i32, i32, i32
  }
  func.func @transform_3(%arg0: i32) -> (i32, i32, i32) {
    %c0_i32 = arith.constant 0 : i32
    %c0_i32_0 = arith.constant 0 : i32
    %c0_i32_1 = arith.constant 0 : i32
    return %arg0, %c0_i32, %c0_i32_0 : i32, i32, i32
  }
}

</mosaic_0001>

<bundles_post_ra>
// kernel: model_forward.1
= control target key start
LH: loop header
LB: loop body
LE: loop exit
PB: predicated region body
PF: predicated region fallthrough
CT: control target
= control target key end

     0   :  { %s456_s12 = smov 0   ;;  %s505_s0 = inlined_call_operand.vmem [shape: f32[16,90], index: 0, kind: input, shape index: {}]   ;;  %s506_s1 = inlined_call_operand.vmem [shape: f32[16,1], index: 1, kind: input, shape index: {}]   ;;  %s507_s2 = inlined_call_operand.vmem [shape: f32[2,90,110], index: 2, kind: input, shape index: {}]   ;;  %s508_s3 = inlined_call_operand.vmem [shape: f32[2,16,110], index: 3, kind: output, shape index: {}]  }
   0x1 LB: > { %s357_s13 = sadd.s32 4294967295, %s433_s12   ;;  %p361_p0 = scmp.ge.s32.totalorder %s433_s12, 1  ;;  %s433_s12 = sphi %s456_s12, %s13_s12  }
   0x2   : > { %p137_p1 = scmp.lt.s32.totalorder %s433_s12, 3 }
   0x4   : > { %p138_p2 = pnand %p361_p0, %p137_p1 }
   0x5   : > { %p161_p3 = scmp.lt.s32.totalorder (!%p138_p2), %s357_s13, 1 }
   0x6   : > { %141 = sbr.rel (%p138_p2) target bundleno = 264 (0x108), region = 32 }
   0xb   : > { %v171_v0 = vld [vmem:[%s505_s0] sm:$0xff]  ;;  %vm197_vm0 = vcmask 736256   ;;  %v435_v1 = vmov 0   ;;  %s510_s13 = smov (!%p161_p3, %s357_s13), 1  ;;  %v186_v3 = vld [vmem:[%s506_s1 + $0x8] sm:$0xff]  ;;  %vm204_vm1 = vcmask 1041408  }
   0xc   : > { %409 = vmatprep.mubr.msk.f32.mxu0 %vm197_vm0, %v171_v0  ;;  %422 = vset.pattern.permute.xlu0 %v435_v1  ;;  %v185_v2 = vld [vmem:[%s506_s1] sm:$0xff]  ;;  %s412_s20 = smul.u32 96, %s510_s13  ;;  %v172_v16 = vld [vmem:[%s505_s0 + $0x8] sm:$0xff]  ;;  %s370_s26 = sshll.u32 %s510_s13, 4  ;;  %vm299_vm2 = vcmask 900096  }
   0xd   : > { %189 = vperm.xlu0 %422, %v185_v2   ;;  %s170_s29 = scalar_lea.vmem %s508_s3, %s370_s26 }
   0xe   : > { %s480_s23 = scalar_lea.vmem %s507_s2, %s412_s20 }
   0xf   : > { %v184_v4 = vld [vmem:[%s480_s23 + $0x58] sm:$0x3]  ;;  %v183_v5 = vld [vmem:[%s480_s23 + $0x50] sm:$0xff]  ;;  %v182_v6 = vld [vmem:[%s480_s23 + $0x48] sm:$0xff] }
  0x10   : > { %385 = vmatprep.subr.msk.mxu0 %vm204_vm1, %v184_v4  ;;  %v181_v7 = vld [vmem:[%s480_s23 + $0x40] sm:$0xff]  ;;  %v180_v8 = vld [vmem:[%s480_s23 + $0x38] sm:$0xff]  ;;  %v179_v9 = vld [vmem:[%s480_s23 + $0x30] sm:$0xff] }
  0x11   : > { %194 = vperm.xlu0 %422, %v186_v3   ;;  %386 = vmatpush3.msk.msra.mxu0 %vm204_vm1, %v184_v4  ;;  %v178_v10 = vld [vmem:[%s480_s23 + $0x28] sm:$0xff]  ;;  %v177_v11 = vld [vmem:[%s480_s23 + $0x20] sm:$0xff]  ;;  %v176_v12 = vld [vmem:[%s480_s23 + $0x18] sm:$0xff] }
  0x12   : > { %387 = vmatprep.subr.mxu0 %v183_v5  ;;  %v175_v13 = vld [vmem:[%s480_s23 + $0x10] sm:$0xff]  ;;  %v174_v14 = vld [vmem:[%s480_s23 + $0x8] sm:$0xff]  ;;  %v173_v15 = vld [vmem:[%s480_s23] sm:$0xff] }
  0x13   : > { %388 = vmatpush3.msra.mxu0 %v183_v5 }
  0x14   : > { %389 = vmatprep.subr.mxu0 %v182_v6 }
  0x15   : > { %390 = vmatpush3.msra.mxu0 %v182_v6 }
  0x16   : > { %391 = vmatprep.subr.mxu0 %v181_v7 }
  0x17   : > { %392 = vmatpush3.msra.mxu0 %v181_v7 }
  0x18   : > { %393 = vmatprep.subr.mxu0 %v180_v8 }
  0x19   : > { %394 = vmatpush3.msra.mxu0 %v180_v8 }
  0x1a   : > { %395 = vmatprep.subr.mxu0 %v179_v9 }
  0x1b   : > { %396 = vmatpush3.msra.mxu0 %v179_v9 }
  0x1c   : > { %397 = vmatprep.subr.mxu0 %v178_v10 }
  0x1d   : > { %398 = vmatpush3.msra.mxu0 %v178_v10 }
  0x1e   : > { %399 = vmatprep.subr.mxu0 %v177_v11 }
  0x1f   : > { %400 = vmatpush3.msra.mxu0 %v177_v11 }
  0x20   : > { %401 = vmatprep.subr.mxu0 %v176_v12 }
  0x21   : > { %402 = vmatpush3.msra.mxu0 %v176_v12 }
  0x22   : > { %403 = vmatprep.subr.mxu0 %v175_v13 }
  0x23   : > { %404 = vmatpush3.msra.mxu0 %v175_v13 }
  0x24   : > { %405 = vmatprep.subr.mxu0 %v174_v14 }
  0x25   : > { %406 = vmatpush3.msra.mxu0 %v174_v14 }
  0x26   : > { %407 = vmatprep.subr.mxu0 %v173_v15 }
  0x27   : > { %408 = vmatpush3.msra.mxu0 %v173_v15 }
  0x28   : > { %410 = vmatmul.mubr.msk.f32.vlgmr.msra.gmra.mxu0 %vm197_vm0, %v172_v16 }
  0x88   : > { %v190_v17 = vpop.permute.xlu0 %189 }
  0x8c   : > { %v195_v18 = vpop.permute.xlu0 %194 }
  0xe8   : > { %v411_v19 = vpop.f32.mrf.mxu0 }
  0xe9   : > { %v280_v20 = vadd.f32 %v411_v19, %v195_v18 }
  0xea   : > { %v274_v21 = vpop.f32.mrf.mxu0 }
  0xeb   : > { %v284_v22 = vmul.f32 %v280_v20, %v280_v20  ;;  %v275_v23 = vadd.f32 %v274_v21, %v190_v17  ;;  %v292_v32 = vmul.f32 0.5, %v280_v20 }
  0xed   : > { %v286_v24 = vmul.f32 0.035677407, %v284_v22  ;;  %v283_v25 = vmul.f32 %v275_v23, %v275_v23  ;;  %v291_v36 = vmul.f32 0.5, %v275_v23 }
  0xef   : > { %v288_v26 = vadd.f32 0.7978846, %v286_v24  ;;  %v285_v27 = vmul.f32 0.035677407, %v283_v25 }
  0xf1   : > { %v290_v28 = vmul.f32 %v288_v26, %v280_v20  ;;  %v287_v29 = vadd.f32 0.7978846, %v285_v27 }
  0xf3   : > { %423 = vtanh.f32 %v290_v28  ;;  %v289_v30 = vmul.f32 %v287_v29, %v275_v23 }
  0xf5   : > { %425 = vtanh.f32 %v289_v30 }
 0x100   : > { %v424_v31 = vpop.eup %423 }
 0x101   : > { %v296_v33 = vadd.f32 1.0, %v424_v31 }
 0x102   : > { %v426_v34 = vpop.eup %425 }
 0x103   : > { %v298_v35 = vmul.f32 %v296_v33, %v292_v32  ;;  %v295_v37 = vadd.f32 1.0, %v426_v34 }
 0x105   : > { %301 = vst.msk [vmem:[%s170_s29 + $0x8] sm:$0xff] %vm299_vm2, %v298_v35  ;;  %v297_v38 = vmul.f32 %v295_v37, %v291_v36 }
 0x107   : > { %300 = vst.msk [vmem:[%s170_s29] sm:$0xff] %vm299_vm2, %v297_v38 }
 0x108 PF: > { %s13_s12 = sadd.s32 1, %s433_s12  }
 0x109   : > { %p10_p4 = scmp.ge.s32.totalorder %s13_s12, 4  }
 0x10b   :  { %12 = sbr.rel (!%p10_p4) target bundleno = 1 (0x1), region = 62 }

</bundles_post_ra>
